<compile_context>
chip_gen: v5e
topology: v5e:2x2
jax: 0.10.0
libtpu: 0.0.40
codegen_flags: <defaults>
</compile_context>

<pallas_src>
import functools

import jax
import jax.numpy as jnp
from jax.experimental import pallas as pl
from jax.experimental.pallas import tpu as pltpu


def _vmem_capacity_bytes():
    try:
        return int(pltpu.get_tpu_info().vmem_capacity_bytes)
    except Exception:
        return 64 * 1024 * 1024  # conservative default (v7x per-TC VMEM)


# ---------------------------------------------------------------------------
# Fused single-pass kernel: pool + excitation + scale, one sample per block.
# ---------------------------------------------------------------------------
def _fused_kernel(x_ref, w1_ref, w2t_ref, o_ref, *, inv_hw):
    """x_ref/o_ref: (1, C, HW); w1_ref: (Cr, C); w2t_ref: (Cr, C) (= w2.T)."""
    x = x_ref[...]
    # Squeeze: global average pool over the lane (HW) axis, f32 accumulation.
    y = jnp.sum(x.astype(jnp.float32), axis=-1) * inv_hw              # (1, C)
    # Excitation (tiny; stays on VPU/XLU/EUP, no MXU tile needed).
    w1 = w1_ref[...].astype(jnp.float32)                              # (Cr, C)
    w2t = w2t_ref[...].astype(jnp.float32)                            # (Cr, C)
    h = jnp.maximum(jnp.sum(w1 * y, axis=-1, keepdims=True), 0.0)     # (Cr, 1)
    s = jax.nn.sigmoid(jnp.sum(w2t * h, axis=0, keepdims=True))       # (1, C)
    # Scale in x's native dtype (no per-vreg up/down cast of the big slab).
    o_ref[...] = (x * s[:, :, None].astype(x.dtype)).astype(o_ref.dtype)


# ---------------------------------------------------------------------------
# Two-pass fallback kernels.
# ---------------------------------------------------------------------------
def _pool_kernel(x_ref, sum_ref, acc_ref, *, hw, tile):
    """x_ref: (1, C, tile); sum_ref: (1, C, 1) f32; acc_ref: (1, C, 128) f32."""
    t = pl.program_id(1)

    @pl.when(t == 0)
    def _():
        acc_ref[...] = jnp.zeros_like(acc_ref)

    # Mask the ragged tail of the (possibly partial) last block: Pallas leaves
    # out-of-range lanes of the input block undefined.
    lane = jax.lax.broadcasted_iota(jnp.int32, x_ref.shape, 2)
    valid = (t * tile + lane) < hw
    xf = jnp.where(valid, x_ref[...].astype(jnp.float32), 0.0)

    # Lane-parallel partial sums (pure VPU adds into a 128-wide accumulator).
    part = xf[:, :, 0:128]
    for k in range(1, tile // 128):
        part = part + xf[:, :, k * 128:(k + 1) * 128]
    acc_ref[...] += part

    # Single cross-lane (XLU) reduce + narrow store only on the last HW tile.
    @pl.when(t == pl.num_programs(1) - 1)
    def _():
        sum_ref[...] = jnp.sum(acc_ref[...], axis=-1, keepdims=True)


def _scale_kernel(x_ref, s_ref, o_ref):
    """o = x * s; x_ref/o_ref: (1, C, tile); s_ref: (1, C, 1) f32."""
    x = x_ref[...]
    o_ref[...] = (x * s_ref[...].astype(x.dtype)).astype(o_ref.dtype)


# ---------------------------------------------------------------------------
# Wrapper
# ---------------------------------------------------------------------------
def se_layer(x, w1, w2, *, force_two_pass=False, block_budget_bytes=None):
    """SE forward.

    x : (B, C, H, W)
    w1: (Cr, C)  first Linear weight, PyTorch (out, in) layout, bias=False
    w2: (C, Cr)  second Linear weight, PyTorch (out, in) layout, bias=False
    """
    B, C, H, W = x.shape
    HW = H * W
    itemsize = jnp.dtype(x.dtype).itemsize

    cap = _vmem_capacity_bytes()
    usable = (cap * 3) // 4                      # headroom for compiler scratch

    x2 = x.reshape(B, C, HW)                     # free (contiguous collapse)

    # ---- fused single-pass path: 1 HBM read + 1 HBM write of x ----
    slab = C * HW * itemsize
    fused_need = (4 * slab                       # in + out, double-buffered
                  + 2 * C * HW * 4               # f32 temporaries in the body
                  + (w1.size + w2.size) * 4
                  + 2 * 1024 * 1024)             # slack
    if (not force_two_pass) and fused_need <= usable:
        out = pl.pallas_call(
            functools.partial(_fused_kernel, inv_hw=1.0 / HW),
            out_shape=jax.ShapeDtypeStruct((B, C, HW), x.dtype),
            grid=(B,),
            in_specs=[pl.BlockSpec((1, C, HW), lambda b: (b, 0, 0)),
                      pl.BlockSpec(w1.shape, lambda b: (0, 0)),
                      pl.BlockSpec((w2.shape[1], w2.shape[0]),
                                   lambda b: (0, 0))],
            out_specs=pl.BlockSpec((1, C, HW), lambda b: (b, 0, 0)),
            compiler_params=pltpu.CompilerParams(
                dimension_semantics=("parallel",),
                vmem_limit_bytes=int(min(usable,
                                         max(fused_need, 16 * 1024 * 1024)))),
        )(x2, w1, jnp.transpose(w2))
        return out.reshape(B, C, H, W)

    # ---- two-pass fallback (per-sample slab too big for VMEM) ----
    if block_budget_bytes is None:
        # Bigger tiles on 128 MiB-VMEM parts (v5e/v6e); keep v7x conservative.
        block_budget_bytes = (8 if cap >= 100 * 1024 * 1024 else 4) * 1024 * 1024
    max_t = max(128, ((block_budget_bytes // (C * itemsize)) // 128) * 128)
    hw128 = ((HW + 127) // 128) * 128
    T = min(max_t, hw128)
    n_t = (HW + T - 1) // T

    vmem_limit = int(min(usable,
                         max(16 * 1024 * 1024,
                             6 * C * T * itemsize + C * 128 * 4
                             + 2 * 1024 * 1024)))

    # pass 1: global average pool (per-sample channel sums in f32)
    pooled = pl.pallas_call(
        functools.partial(_pool_kernel, hw=HW, tile=T),
        out_shape=jax.ShapeDtypeStruct((B, C, 1), jnp.float32),
        grid=(B, n_t),
        in_specs=[pl.BlockSpec((1, C, T), lambda b, t: (b, 0, t))],
        out_specs=pl.BlockSpec((1, C, 1), lambda b, t: (b, 0, 0)),
        scratch_shapes=[pltpu.VMEM((1, C, 128), jnp.float32)],
        compiler_params=pltpu.CompilerParams(
            dimension_semantics=("parallel", "arbitrary"),
            vmem_limit_bytes=vmem_limit),
    )(x2)

    # excitation: tiny FCs, far below one MXU tile -> plain XLA
    y = pooled[:, :, 0] * (1.0 / HW)                       # true-HW mean
    h = jnp.maximum(y @ w1.T.astype(jnp.float32), 0.0)     # (B, Cr)
    s = jax.nn.sigmoid(h @ w2.T.astype(jnp.float32))       # (B, C)
    s = s[:, :, None]                                      # (B, C, 1), f32

    # pass 2: elementwise scale (partial last block is masked on store)
    out = pl.pallas_call(
        _scale_kernel,
        out_shape=jax.ShapeDtypeStruct((B, C, HW), x.dtype),
        grid=(B, n_t),
        in_specs=[pl.BlockSpec((1, C, T), lambda b, t: (b, 0, t)),
                  pl.BlockSpec((1, C, 1), lambda b, t: (b, 0, 0))],
        out_specs=pl.BlockSpec((1, C, T), lambda b, t: (b, 0, t)),
        compiler_params=pltpu.CompilerParams(
            dimension_semantics=("parallel", "parallel"),
            vmem_limit_bytes=vmem_limit),
    )(x2, s)

    return out.reshape(B, C, H, W)


def se_layer_ref(x, w1, w2):
    """Pure-JAX reference mirroring the PyTorch forward."""
    y = jnp.mean(x, axis=(2, 3))                # (B, C)
    y = jnp.maximum(y @ w1.T, 0.0)              # (B, Cr)
    y = jax.nn.sigmoid(y @ w2.T)                # (B, C)
    return x * y[:, :, None, None]


if __name__ == "__main__":
    # channel=32, reduction=16 -> hidden Cr = 2 (channel must be >= reduction).
    B, C, H, W = 2, 32, 16, 16
    reduction = 16
    Cr = C // reduction

    key = jax.random.PRNGKey(0)
    kx, k1, k2 = jax.random.split(key, 3)
    x = jax.random.normal(kx, (B, C, H, W), dtype=jnp.float32)
    # PyTorch Linear (out_features, in_features) layout, bias=False.
    w1 = jax.random.normal(k1, (Cr, C), dtype=jnp.float32) * 0.1
    w2 = jax.random.normal(k2, (C, Cr), dtype=jnp.float32) * 0.1

    # Fused single-pass path.
    out = jax.block_until_ready(se_layer(x, w1, w2))
    ref = se_layer_ref(x, w1, w2)
    assert out.shape == (B, C, H, W)
    assert jnp.allclose(out, ref, atol=1e-5, rtol=1e-5), "fused path mismatch"

    # Two-pass fallback path (forced), with a ragged HW tail (15*15 = 225)
    # and a tiny tile budget so the pool accumulates across multiple tiles.
    xr = jax.random.normal(kx, (B, C, 15, 15), dtype=jnp.float32)
    out2 = jax.block_until_ready(
        se_layer(xr, w1, w2, force_two_pass=True, block_budget_bytes=16 * 1024))
    ref2 = se_layer_ref(xr, w1, w2)
    assert out2.shape == (B, C, 15, 15)
    assert jnp.allclose(out2, ref2, atol=1e-5, rtol=1e-5), "two-pass mismatch"

    print("KERNEL_OK")
</pallas_src>

<mosaic_0001>
module attributes {stable_mosaic.version = 11 : i64} {
  func.func @_fused_kernel(%arg0: i32, %arg1: memref<1x32x256xf32, #tpu.memory_space<vmem>>, %arg2: memref<2x32xf32, #tpu.memory_space<vmem>>, %arg3: memref<2x32xf32, #tpu.memory_space<vmem>>, %arg4: memref<1x32x256xf32, #tpu.memory_space<vmem>>) attributes {dimension_semantics = [#tpu.dimension_semantics<parallel>], iteration_bounds = array<i64: 2>, scalar_prefetch = 0 : i64, scratch_operands = 0 : i64, tpu.core_type = #tpu.core_type<tc>, window_params = [{transform_indices = @transform_0, window_bounds = array<i64: 1, 32, 256>}, {pipeline_mode = #tpu.pipeline_mode<synchronous>, transform_indices = @transform_1, window_bounds = array<i64: 2, 32>}, {pipeline_mode = #tpu.pipeline_mode<synchronous>, transform_indices = @transform_2, window_bounds = array<i64: 2, 32>}, {transform_indices = @transform_3, window_bounds = array<i64: 1, 32, 256>}]} {
    %c0 = arith.constant 0 : index
    %c0_0 = arith.constant 0 : index
    %c0_1 = arith.constant 0 : index
    %0 = vector.load %arg1[%c0, %c0_0, %c0_1] : memref<1x32x256xf32, #tpu.memory_space<vmem>>, vector<1x32x256xf32>
    %cst = arith.constant dense<0.000000e+00> : vector<1x32xf32>
    %1 = vector.multi_reduction <add>, %0, %cst [2] : vector<1x32x256xf32> to vector<1x32xf32>
    %cst_2 = arith.constant 3.906250e-03 : f32
    %2 = vector.broadcast %cst_2 : f32 to vector<1x32xf32>
    %3 = arith.mulf %1, %2 : vector<1x32xf32>
    %c0_3 = arith.constant 0 : index
    %c0_4 = arith.constant 0 : index
    %4 = vector.load %arg2[%c0_3, %c0_4] : memref<2x32xf32, #tpu.memory_space<vmem>>, vector<2x32xf32>
    %c0_5 = arith.constant 0 : index
    %c0_6 = arith.constant 0 : index
    %5 = vector.load %arg3[%c0_5, %c0_6] : memref<2x32xf32, #tpu.memory_space<vmem>>, vector<2x32xf32>
    %6 = vector.broadcast %3 : vector<1x32xf32> to vector<2x32xf32>
    %7 = arith.mulf %4, %6 : vector<2x32xf32>
    %cst_7 = arith.constant dense<0.000000e+00> : vector<2xf32>
    %8 = vector.multi_reduction <add>, %7, %cst_7 [1] : vector<2x32xf32> to vector<2xf32>
    %9 = vector.shape_cast %8 : vector<2xf32> to vector<2x1xf32>
    %cst_8 = arith.constant 0.000000e+00 : f32
    %10 = vector.broadcast %cst_8 : f32 to vector<2x1xf32>
    %11 = arith.maximumf %9, %10 : vector<2x1xf32>
    %12 = vector.broadcast %11 : vector<2x1xf32> to vector<2x32xf32>
    %13 = arith.mulf %5, %12 : vector<2x32xf32>
    %cst_9 = arith.constant dense<0.000000e+00> : vector<32xf32>
    %14 = vector.multi_reduction <add>, %13, %cst_9 [0] : vector<2x32xf32> to vector<32xf32>
    %15 = vector.shape_cast %14 : vector<32xf32> to vector<1x32xf32>
    %16 = arith.negf %15 : vector<1x32xf32>
    %17 = math.exp %16 : vector<1x32xf32>
    %cst_10 = arith.constant 1.000000e+00 : f32
    %18 = vector.broadcast %cst_10 : f32 to vector<1x32xf32>
    %19 = arith.addf %18, %17 : vector<1x32xf32>
    %20 = arith.divf %18, %19 : vector<1x32xf32>
    %21 = vector.shape_cast %20 : vector<1x32xf32> to vector<1x32x1xf32>
    %22 = vector.broadcast %21 : vector<1x32x1xf32> to vector<1x32x256xf32>
    %23 = arith.mulf %0, %22 : vector<1x32x256xf32>
    %c0_11 = arith.constant 0 : index
    %c0_12 = arith.constant 0 : index
    %c0_13 = arith.constant 0 : index
    %24 = vector.load %arg4[%c0_11, %c0_12, %c0_13] : memref<1x32x256xf32, #tpu.memory_space<vmem>>, vector<1x32x256xf32>
    tpu.vector_store %arg4[%c0_11, %c0_12, %c0_13], %23 {strides = array<i32>} : memref<1x32x256xf32, #tpu.memory_space<vmem>>, vector<1x32x256xf32>,
    return
  }
  func.func @transform_0(%arg0: i32) -> (i32, i32, i32) {
    %c0_i32 = arith.constant 0 : i32
    %c0_i32_0 = arith.constant 0 : i32
    %c0_i32_1 = arith.constant 0 : i32
    return %arg0, %c0_i32, %c0_i32_0 : i32, i32, i32
  }
  func.func @transform_1(%arg0: i32) -> (i32, i32) {
    %c0_i32 = arith.constant 0 : i32
    %c0_i32_0 = arith.constant 0 : i32
    %c0_i32_1 = arith.constant 0 : i32
    return %c0_i32, %c0_i32_0 : i32, i32
  }
  func.func @transform_2(%arg0: i32) -> (i32, i32) {
    %c0_i32 = arith.constant 0 : i32
    %c0_i32_0 = arith.constant 0 : i32
    %c0_i32_1 = arith.constant 0 : i32
    return %c0_i32, %c0_i32_0 : i32, i32
  }
  func.func @transform_3(%arg0: i32) -> (i32, i32, i32) {
    %c0_i32 = arith.constant 0 : i32
    %c0_i32_0 = arith.constant 0 : i32
    %c0_i32_1 = arith.constant 0 : i32
    return %arg0, %c0_i32, %c0_i32_0 : i32, i32, i32
  }
}

</mosaic_0001>

<bundles_post_ra>
// kernel: tpu_custom_call.1
= control target key start
LH: loop header
LB: loop body
LE: loop exit
PB: predicated region body
PF: predicated region fallthrough
CT: control target
= control target key end

     0   :  { %8 = vsyncpa [#allocation3], 0  ;;  %s917_s0 = inlined_call_operand.hbm [shape: f32[2,32,256], index: 0, kind: input, shape index: {}]   ;;  %s918_s1 = inlined_call_operand.hbm [shape: f32[2,32], index: 1, kind: input, shape index: {}]   ;;  %s919_s2 = inlined_call_operand.hbm [shape: f32[2,32], index: 2, kind: input, shape index: {}]   ;;  %s920_s3 = inlined_call_operand.hbm [shape: f32[2,32,256], index: 3, kind: output, shape index: {}]  }
   0x1   :  { %10 = vsyncpa [#allocation3 + $0x1], 0 }
   0x2   :  { %11 = vsyncpa [#allocation6], 0 }
   0x3   :  { %12 = vsyncpa [#allocation4], 0 }
   0x4   :  { %14 = vsyncpa [#allocation4 + $0x1], 0  ;;  %s736_s12 = smov 0   ;;  %s738_s13 = smov 0  }
   0x5   :  { %s740_s14 = smov 0   ;;  %s742_s15 = smov 0  }
   0x6 LB: > { %s757_s16 = sadd.s32 4294967295, %s708_s15   ;;  %s447_s17 = sadd.s32 4294967294, %s708_s15   ;;  %s708_s15 = sphi %s742_s15, %s931_s15   ;;  %s704_s14 = sphi %s740_s14, %s930_s14   ;;  %s700_s13 = sphi %s738_s13, %s929_s13   ;;  %s696_s12 = sphi %s736_s12, %s928_s12  }
   0x7   : > { %s761_s18 = sadd.s32 1, %s708_s15   ;;  %s27_s19 = sadd.s32 1, %s704_s14 }
   0x8   : > { %s24_s20 = ssub.s32 %s708_s15, %s761_s18  ;;  %p34_p0 = scmp.ne.s32.totalorder %s704_s14, %s700_s13 }
   0x9   : > { %p25_p1 = scmp.eq.s32.totalorder %s24_s20, 0  ;;  %p35_p2 = scmp.eq.s32.totalorder %s708_s15, 0 }
   0xa   : > { %p40_p3 = scmp.ne.s32.totalorder %s700_s13, %s696_s12  ;;  %p41_p4 = scmp.eq.s32.totalorder %s757_s16, 0 }
   0xb   : > { %s773_s21 = scalar_select %p25_p1, %s704_s14, %s27_s19  }
   0xc   : > { %p775_p5 = por %p35_p2, %p34_p0  ;;  %p781_p6 = por %p41_p4, %p40_p3 }
   0xd   : > { %p106_p7 = scmp.eq.s32.totalorder %s757_s16, 1  ;;  %p112_p8 = scmp.eq.s32.totalorder %s447_s17, 1 }
   0xe   : > { %p448_p9 = scmp.ge.s32.totalorder %s708_s15, 1  ;;  %p119_p10 = scmp.lt.s32.totalorder %s708_s15, 3 }
   0xf   : > { %p788_p11 = por %p106_p7, %p34_p0  ;;  %p792_p12 = por %p112_p8, %p40_p3 }
  0x10   : > { %p796_p13 = pnand %p448_p9, %p119_p10  ;;  %s131_s29 = sshll.u32 %s918_s1, 4  ;;  %s132_s29 = int_to_ptr.hbm [resolvable:$true] %s131_s29 }
  0x11   : > { %s710_s30 = smov [#allocation5]   ;;  %p497_p3 = scmp.lt.s32.totalorder %s708_s15, 2 }
  0x12   : > { %p480_p1 = pneg %p796_p13  ;;  %s133_s4 = sshll.u32 %s710_s30, 4  ;;  %s134_s4 = int_to_ptr.vmem [resolvable:$true] %s133_s4 }
  0x13   : > { %s143_s7 = sshll.u32 %s919_s2, 4  ;;  %p814_p7 = pnand %p497_p3, %p775_p5  ;;  %s144_s7 = int_to_ptr.hbm [resolvable:$true] %s143_s7 }
  0x14   : > { %p481_p2 = pnand %p480_p1, %p41_p4  ;;  %s711_s9 = smov [#allocation7]  }
  0x15   : > { %s145_s10 = sshll.u32 %s711_s9, 4  ;;  %s156_s11 = sand.u32 1, %s704_s14   ;;  %s146_s10 = int_to_ptr.vmem [resolvable:$true] %s145_s10 }
  0x16   : > { %483 = dma.hbm_to_vmem [thread:$0]  (!%p481_p2), %s132_s29, 32, %s134_s4, [#allocation6]  }
  0x17   : > { %486 = dma.hbm_to_vmem [thread:$0]  (!%p481_p2), %s144_s7, 32, %s146_s10, [#allocation6]  }
  0x18   : > { %s452_s17 = sshll.u32 %s156_s11, 6  ;;  %s466_s19 = sshll.u32 %s708_s15, 6 }
  0x19   : > { %s165_s28 = scalar_lea.hbm %s917_s0, %s466_s19  ;;  %s160_s30 = scalar_lea.vmem [#allocation2], %s452_s17 }
  0x1a   : > { %s168_s5 = sshll.u32 %s160_s30, 4  ;;  %s166_s29 = sshll.u32 %s165_s28, 4  ;;  %s169_s5 = int_to_ptr.vmem [resolvable:$true] %s168_s5  ;;  %s167_s29 = int_to_ptr.hbm [resolvable:$true] %s166_s29 }
  0x1b   : > { %s157_s22 = scalar_lea.sflag [#allocation3], %s156_s11  ;;  %s608_s4 = sshra.s32 %s167_s29, 4  ;;  %s609_s4 = int_to_ptr.hbm [resolvable:$true] %s608_s4 }
  0x1c   : > { %s610_s6 = scalar_lea.hbm %s609_s4, 64  ;;  %p612_p8 = pneg %p814_p7 }
  0x1d   : > { %p611_p5 = scmp.ne.s32.totalorder %s609_s4, %s610_s6  ;;  %s615_s10 = scalar_lea.hbm %s917_s0, 128 }
  0x1e   : > { %p616_p1 = scmp.lt.s32.totalorder %s609_s4, %s917_s0  ;;  %p617_p2 = scmp.lt.s32.totalorder %s615_s10, %s610_s6 }
  0x1f   : > { %p613_p9 = pnand %p612_p8, %p611_p5 }
  0x20   : > { %p618_p3 = por %p617_p2, %p616_p1 }
  0x21   : > { %p614_p10 = pneg %p613_p9 }
  0x23   : > { %p619_p0 = pnand %p618_p3, %p614_p10 }
  0x25   : > { %622 = shalt.err (!%p619_p0)
}
  0x26   : > { %s712_s11 = smov 256   ;;  %s713_s17 = smov 16  }
  0x27   : > { %490 = dma.hbm_to_vmem [thread:$0]  (!%p814_p7), %s167_s29, 1024, %s169_s5, %s157_s22, %s712_s11, %s712_s11, %s713_s17  }
  0x28   : > { %180 = sbr.rel (%p796_p13) target bundleno = 470 (0x1d6), region = 32  ;;  %s836_s27 = sand.u32 (!%p796_p13), 1, %s700_s13  }
  0x29   : > { %s456_s28 = sshll.u32 (!%p796_p13), %s836_s27, 6  ;;  %s183_s30 = scalar_lea.sflag (!%p796_p13), [#allocation3], %s836_s27 }
  0x2a   : > { %s186_s4 = scalar_lea.vmem (!%p796_p13), [#allocation2], %s456_s28 }
  0x2d   : > { %683 = dma.done.wait (%p781_p6), %s183_s30, 1024  }
  0x2e   : > { %685 = vsyncadd (%p781_p6), %s183_s30, 4294966272 }
  0x2f   : > { %687 = dma.done.wait (%p41_p4), [#allocation6], 64  }
  0x30   : > { %689 = vsyncadd (%p41_p4), [#allocation6], 4294967232  ;;  %v850_v0 = vld [vmem:[%s186_s4] sm:$0xff]  ;;  %v852_v1 = vld [vmem:[%s186_s4 + $0x8] sm:$0xff]  ;;  %v250_v12 = vlaneseq  ;;  %vm255_vm0 = vcmask 130112   ;;  %vm259_vm1 = vcmask 195712  }
  0x31   : > { %v854_v2 = vld [vmem:[%s186_s4 + $0x20] sm:$0xff]  ;;  %v228_v3 = vadd.f32 %v852_v1, %v850_v0  ;;  %v858_v4 = vld [vmem:[%s186_s4 + $0x28] sm:$0xff]  ;;  %v862_v6 = vld [vmem:[%s186_s4 + $0x10] sm:$0xff]  ;;  %vm263_vm2 = vcmask 261312   ;;  %vm267_vm3 = vcmask 254976   ;;  %s219_s23 = scalar_lea.vmem [#allocation8], %s456_s28 }
  0x32   : > { %v234_v5 = vadd.f32 %v858_v4, %v854_v2  ;;  %v864_v7 = vld [vmem:[%s186_s4 + $0x18] sm:$0xff]  ;;  %v866_v8 = vld [vmem:[%s186_s4 + $0x30] sm:$0xff]  ;;  %v251_v15 = vand.u32 127, %v250_v12  ;;  %v244_v30 = vld [vmem:[#allocation5] sm:$0x3]  ;;  %v300_v35 = vshrl.u32 %v250_v12, 7 }
  0x33   : > { %229 = vadd.xlane.f32.xlu0 %v228_v3  ;;  %v868_v9 = vld [vmem:[%s186_s4 + $0x38] sm:$0xff]  ;;  %v231_v10 = vadd.f32 %v864_v7, %v862_v6  ;;  %v245_v38 = vld [vmem:[#allocation7] sm:$0x3]  ;;  %s467_s26 = sshll.u32 %s757_s16, 6  ;;  %s352_s22 = sshll.u32 %s219_s23, 4  ;;  %s353_s22 = int_to_ptr.vmem [resolvable:$true] %s352_s22 }
  0x34   : > { %235 = vadd.xlane.f32.xlu1 %v234_v5  ;;  %v237_v11 = vadd.f32 %v868_v9, %v866_v8  ;;  %v253_v17 = vadd.s32 4294967288, %v251_v15  ;;  %v257_v18 = vadd.s32 4294967280, %v251_v15  ;;  %v261_v21 = vadd.s32 4294967272, %v251_v15  ;;  %539 = vset.pattern.permute.xlu2 %v300_v35  ;;  %s351_s29 = scalar_lea.hbm %s920_s3, %s467_s26  ;;  %s340_s16 = scalar_lea.sflag [#allocation4], %s836_s27 }
  0x35   : > { %v313_v36 = vadd.s32 16, %v300_v35  ;;  %v307_v37 = vadd.s32 8, %v300_v35  ;;  %v319_v62 = vadd.s32 24, %v300_v35  ;;  %s354_s6 = sshll.u32 %s351_s29, 4  ;;  %s658_s19 = scalar_lea.hbm %s920_s3, 128  ;;  %s355_s6 = int_to_ptr.hbm [resolvable:$true] %s354_s6 }
  0x36   : > { %s652_s7 = sshra.s32 %s355_s6, 4  ;;  %s653_s7 = int_to_ptr.hbm [resolvable:$true] %s652_s7 }
  0x37   : > { %541 = vset.pattern.permute.xlu1 %v313_v36  ;;  %540 = vset.pattern.permute.xlu0 %v307_v37  ;;  %s654_s9 = scalar_lea.hbm %s653_s7, 64  ;;  %p659_p0 = scmp.lt.s32.totalorder %s653_s7, %s920_s3 }
  0x38   : > { %p655_p4 = scmp.ne.s32.totalorder %s653_s7, %s654_s9  ;;  %p660_p7 = scmp.lt.s32.totalorder %s658_s19, %s654_s9 }
  0x3a   : > { %p656_p6 = pnand %p655_p4, %p788_p11  ;;  %p661_p5 = por %p660_p7, %p659_p0 }
  0x3b   : > { %232 = vadd.xlane.f32.xlu0 %v231_v10 }
  0x3c   : > { %238 = vadd.xlane.f32.xlu1 %v237_v11  ;;  %p657_p13 = pneg %p656_p6 }
  0x3e   : > { %p662_p8 = pnand %p661_p5, %p657_p13 }
  0xa6   : > { %v230_v13 = vpop.xlane.xlu0 %229 }
  0xa7   : > { %v236_v14 = vpop.xlane.xlu1 %235  ;;  %v240_v16 = vmul.f32 0.00390625, %v230_v13 }
  0xa8   : > { %v242_v19 = vmul.f32 0.00390625, %v236_v14 }
  0xa9   : > { %v252_v25 = vperm.slane %v240_v16, %v251_v15 }
  0xaa   : > { %v258_v27 = vperm.slane %v242_v19, %v257_v18 }
  0xae   : > { %v233_v20 = vpop.xlane.xlu0 %232 }
  0xaf   : > { %v241_v22 = vmul.f32 0.00390625, %v233_v20  ;;  %v239_v23 = vpop.xlane.xlu1 %238 }
  0xb0   : > { %v243_v24 = vmul.f32 0.00390625, %v239_v23 }
  0xb1   : > { %v254_v26 = vperm.slane %v241_v22, %v253_v17 }
  0xb2   : > { %v262_v28 = vperm.slane %v243_v24, %v261_v21 }
  0xb3   : > { %v256_v29 = vsel %vm255_vm0, %v254_v26, %v252_v25 }
  0xb4   : > { %v260_v31 = vsel %vm259_vm1, %v258_v27, %v256_v29 }
  0xb5   : > { %v264_v32 = vsel %vm263_vm2, %v262_v28, %v260_v31 }
  0xb6   : > { %v266_v33 = vmul.f32 %v264_v32, %v244_v30 }
  0xb8   : > { %v268_v34 = vsel %vm267_vm3, %v266_v33, 0.0 }
  0xb9   : > { %269 = vadd.xlane.f32.xlu2 %v268_v34 }
 0x12c   : > { %v270_v39 = vpop.xlane.xlu2 %269 }
 0x12d   : > { %v271_v40 = vmax.f32 %v270_v39, 0.0 }
 0x12f   : > { %v272_v41 = vmul.f32 %v271_v40, %v245_v38 }
 0x131   : > { %v273_v42 = vsel %vm267_vm3, %v272_v41, 0.0 }
 0x132   : > { %v274_v43 = vrot.slane %v273_v42, 4 }
 0x134   : > { %v275_v44 = vadd.f32 %v274_v43, %v273_v42 }
 0x136   : > { %v276_v45 = vrot.slane %v275_v44, 2 }
 0x138   : > { %v277_v46 = vadd.f32 %v276_v45, %v275_v44 }
 0x13a   : > { %v278_v47 = vrot.slane %v277_v46, 1 }
 0x13c   : > { %v279_v48 = vadd.f32 %v278_v47, %v277_v46 }
 0x13e   : > { %v460_v49 = vmul.f32 -1.442695, %v279_v48 }
 0x140   : > { %544 = vpow2.f32 %v460_v49 }
 0x146   : > { %v545_v50 = vpop.eup %544 }
 0x147   : > { %v283_v51 = vadd.f32 1.0, %v545_v50 }
 0x149   : > { %546 = vrcp.f32 %v283_v51  ;;  %v295_v55 = vand.u32 2147483648, %v283_v51  ;;  %v293_v57 = vand.u32 2147483647, %v283_v51  ;;  %vm289_vm5 = vweird.f32 %v283_v51 }
 0x14b   : > { %v296_v59 = vor.u32 1.1754944e-38, %v295_v55  ;;  %vm294_vm7 = vcmp.eq.f32.partialorder %v293_v57, 8.507059e+37 }
 0x14f   : > { %v547_v52 = vpop.eup %546 }
 0x150   : > { %v285_v53 = vmul.f32 %v547_v52, %v283_v51  ;;  %vm290_vm4 = vweird.f32 %v547_v52 }
 0x151   : > { %vm291_vm6 = vmor %vm289_vm5, %vm290_vm4 }
 0x152   : > { %v286_v54 = vsub.f32 1.0, %v285_v53 }
 0x154   : > { %v287_v56 = vmul.f32 %v547_v52, %v286_v54 }
 0x156   : > { %v288_v58 = vadd.f32 %v547_v52, %v287_v56 }
 0x158   : > { %v292_v60 = vsel %vm291_vm6, %v547_v52, %v288_v58 }
 0x159   : > { %v297_v61 = vsel %vm294_vm7, %v296_v59, %v292_v60 }
 0x15a   : > { %315 = vperm.xlu1 %541, %v297_v61   ;;  %309 = vperm.xlu0 %540, %v297_v61  }
 0x15b   : > { %303 = vperm.xlu2 %539, %v297_v61  }
 0x162   : > { %543 = vset.pattern.permute.xlu0 %v319_v62 }
 0x163   : > { %542 = vset.pattern.permute.xlu2 %v319_v62 }
 0x16b   : > { %321 = vperm.xlu2 %542, %v297_v61  }
 0x1b5   : > { %v304_v63 = vpop.permute.xlu2 %303 }
 0x1b6   : > { %v323_v3 = vmul.f32 %v304_v63, %v850_v0  ;;  %v324_v5 = vmul.f32 %v304_v63, %v852_v1 }
 0x1b8   : > { %331 = vst [vmem:[%s219_s23] sm:$0xff] %v323_v3 }
 0x1b9   : > { %332 = vst [vmem:[%s219_s23 + $0x8] sm:$0xff] %v324_v5 }
 0x1c5   : > { %v322_v10 = vpop.permute.xlu2 %321 }
 0x1c6   : > { %v329_v11 = vmul.f32 %v322_v10, %v866_v8  ;;  %v330_v12 = vmul.f32 %v322_v10, %v868_v9 }
 0x1c8   : > { %337 = vst [vmem:[%s219_s23 + $0x30] sm:$0xff] %v329_v11 }
 0x1c9   : > { %338 = vst [vmem:[%s219_s23 + $0x38] sm:$0xff] %v330_v12 }
 0x1cc   : > { %v316_v0 = vpop.permute.xlu1 %315  ;;  %v310_v1 = vpop.permute.xlu0 %309 }
 0x1cd   : > { %v327_v13 = vmul.f32 %v316_v0, %v854_v2  ;;  %v328_v14 = vmul.f32 %v316_v0, %v858_v4  ;;  %v325_v8 = vmul.f32 %v310_v1, %v862_v6  ;;  %v326_v9 = vmul.f32 %v310_v1, %v864_v7 }
 0x1cf   : > { %335 = vst [vmem:[%s219_s23 + $0x20] sm:$0xff] %v327_v13 }
 0x1d0   : > { %336 = vst [vmem:[%s219_s23 + $0x28] sm:$0xff] %v328_v14 }
 0x1d1   : > { %333 = vst [vmem:[%s219_s23 + $0x10] sm:$0xff] %v325_v8 }
 0x1d2   : > { %334 = vst [vmem:[%s219_s23 + $0x18] sm:$0xff] %v326_v9 }
 0x1d3   : > { %665 = shalt.err (!%p662_p8)
}
 0x1d4   : > { %s714_s27 = smov 256   ;;  %s715_s28 = smov 16  }
 0x1d5   : > { %478 = dma.vmem_to_hbm [thread:$0]  (%p788_p11), %s353_s22, 1024, %s355_s6, %s340_s16, %s714_s27, %s714_s27, %s715_s28  }
 0x1d6 PF: > { %s369_s30 = sand.u32 1, %s696_s12   ;;  %p927_p9 = scmp.ge.s32.totalorder %s708_s15, 2 }
 0x1d7   : > { %s370_s4 = scalar_lea.sflag [#allocation4], %s369_s30 }
 0x1d8   : > { %p492_p10 = pnand %p927_p9, %p792_p12 }
 0x1da   : > { %p493_p1 = pneg %p492_p10 }
 0x1dc   : > { %691 = dma.done.wait (%p493_p1), %s370_s4, 1024  }
 0x1dd   : > { %693 = vsyncadd (%p493_p1), %s370_s4, 4294966272  ;;  %p17_p2 = scmp.ge.s32.totalorder %s761_s18, 4   ;;  %s928_s12 = smov %s700_s13 }
 0x1de   : > { %s929_s13 = smov %s704_s14  ;;  %s930_s14 = smov %s773_s21 }
 0x1df   : > { %s931_s15 = smov %s761_s18  ;;  %19 = sbr.rel (!%p17_p2) target bundleno = 6 (0x6), region = 85 }
 0x1e4   :  { %376 = vsyncpa [#allocation3], 1 }
 0x1e5   :  { %378 = vsyncpa [#allocation3 + $0x1], 1 }
 0x1e6   :  { %379 = vsyncpa [#allocation6], 1 }
 0x1e7   :  { %380 = vsyncpa [#allocation4], 1 }
 0x1e8   :  { %382 = vsyncpa [#allocation4 + $0x1], 1 }

</bundles_post_ra>
